<compile_context>
chip_gen: v7x
topology: tpu7x:2x2x1
jax: 0.10.0
libtpu: 0.0.40
codegen_flags: <defaults>
</compile_context>

<pallas_src>
import jax
import jax.numpy as jnp
from jax.experimental import pallas as pl
from jax.experimental.pallas import tpu as pltpu

H = 128
W = 128

# Deterministic stand-in "model": 3x3 zero-padded conv (weights sum to 1) + bias.
# TODO(synk): original forward takes an arbitrary external `model`; replaced by
# this fixed single-channel linear conv.
CONV_W = [[0.05, 0.10, 0.05],
          [0.10, 0.40, 0.10],
          [0.05, 0.10, 0.05]]
CONV_B = 0.001


def _tta_averaged_taps(w):
    """Average of the 8 TTA-equivalent 3x3 kernels (trace-time, pure Python).

    For a linear conv model with symmetric zero padding on a square image,
    unaug_j(model(aug_j(x))) == conv of x with the taps permuted by the
    augmentation, so the 8-way TTA average collapses to one conv with the
    averaged taps.  Valid only because the stand-in model is linear.
    """
    def flip_h(k):
        return [k[2], k[1], k[0]]

    def flip_w(k):
        return [list(reversed(row)) for row in k]

    def transpose(k):
        return [[k[b][a] for b in range(3)] for a in range(3)]

    acc = [[0.0] * 3 for _ in range(3)]
    for j in range(8):
        fh, fw, tr = j % 2 == 1, j % 4 > 1, j > 3
        k = [list(row) for row in w]
        # aug applies flip_h, then flip_w, then transpose to the image; the
        # equivalent kernel applies them in reverse order to the taps.
        if tr:
            k = transpose(k)
        if fw:
            k = flip_w(k)
        if fh:
            k = flip_h(k)
        for a in range(3):
            for b in range(3):
                acc[a][b] += k[a][b] / 8.0
    return acc


K_EFF = _tta_averaged_taps(CONV_W)

# Separable + delta decomposition of K_EFF (trace time):
#   K_EFF == SEP * ([1,2,1] outer [1,2,1]) + DELTA * center_delta
SEP = K_EFF[0][0]
DELTA = K_EFF[1][1] - 4.0 * SEP
_S = [[1.0, 2.0, 1.0], [2.0, 4.0, 2.0], [1.0, 2.0, 1.0]]
for _a in range(3):
    for _b in range(3):
        _exp = SEP * _S[_a][_b] + (DELTA if (_a, _b) == (1, 1) else 0.0)
        assert abs(K_EFF[_a][_b] - _exp) < 1e-9, (
            "K_EFF is not separable+delta; revert to the 9-tap conv loop.")


def _u16_bits_to_f32(v_i16):
    """int16-viewed uint16 bits -> float32 value in [0, 65535]."""
    return (v_i16.astype(jnp.int32) & 0xFFFF).astype(jnp.float32)


# ----------------------------------------------------------------------------
# Fused kernel: model + collapsed TTA + quantize + per-image lane partial sums.
# ----------------------------------------------------------------------------
def validate_kernel(inp_ref, gt_ref, stats_ref):
    # inp_ref, gt_ref: (BN, H, W) int16 (uint16 bits)
    # stats_ref: (BN, 3, W) f32 lane-partials:
    #   row 0 = sum_i gt, row 1 = sum_i |out - gt|, row 2 = sum_i (out - gt)^2
    bn = inp_ref.shape[0]

    # Edge masks for the zero-padded 3x3 conv, hoisted out of the image loop.
    row = jax.lax.broadcasted_iota(jnp.int32, (H, 1), 0)
    col = jax.lax.broadcasted_iota(jnp.int32, (1, W), 1)
    m_row_p1 = row < H - 1   # valid where we pulled x[i+1, :]
    m_row_m1 = row >= 1      # valid where we pulled x[i-1, :]
    m_col_p1 = col < W - 1   # valid where we pulled x[:, j+1]
    m_col_m1 = col >= 1      # valid where we pulled x[:, j-1]

    @pl.loop(0, bn)
    def _(b):
        x = _u16_bits_to_f32(inp_ref[b]) * (1.0 / 65536.0)   # model input scale

        # Separable conv: [1,2,1] row pass (sublane rolls), then column pass
        # (lane rolls).  Zero padding via the hoisted edge masks.
        dn = pltpu.roll(x, shift=H - 1, axis=0)               # x[i+1, :]
        up = pltpu.roll(x, shift=1, axis=0)                   # x[i-1, :]
        r = jnp.where(m_row_p1, dn, 0.0) + 2.0 * x + jnp.where(m_row_m1, up, 0.0)

        rt = pltpu.roll(r, shift=W - 1, axis=1)               # r[:, j+1]
        lt = pltpu.roll(r, shift=1, axis=1)                   # r[:, j-1]
        c = jnp.where(m_col_p1, rt, 0.0) + 2.0 * r + jnp.where(m_col_m1, lt, 0.0)

        pred = SEP * c + DELTA * x + CONV_B

        # oup = (avg * 65536).clip(0, 65535).astype(uint16); trunc == floor
        # because the clipped value is >= 0.
        out = jnp.floor(jnp.clip(pred * 65536.0, 0.0, 65535.0))

        # Ground truth converted only now, after the conv's hot region.
        g = _u16_bits_to_f32(gt_ref[b])                       # gt in [0, 65535]
        d = out - g

        gsum = jnp.sum(g, axis=0, keepdims=True)              # (1, W)
        asum = jnp.sum(jnp.abs(d), axis=0, keepdims=True)     # (1, W)
        ssum = jnp.sum(d * d, axis=0, keepdims=True)          # (1, W)
        stats_ref[b] = jnp.concatenate([gsum, asum, ssum], axis=0)


def _pick_block_n(n):
    for bn in (32, 16, 8, 4, 2, 1):
        if n % bn == 0:
            return bn
    return 1


def _validate_stats(inp_i16, gt_i16):
    n = inp_i16.shape[0]
    bn = _pick_block_n(n)
    return pl.pallas_call(
        validate_kernel,
        out_shape=jax.ShapeDtypeStruct((n, 3, W), jnp.float32),
        grid=(n // bn,),
        in_specs=[pl.BlockSpec((bn, H, W), lambda i: (i, 0, 0)),
                  pl.BlockSpec((bn, H, W), lambda i: (i, 0, 0))],
        out_specs=pl.BlockSpec((bn, 3, W), lambda i: (i, 0, 0)),
        compiler_params=pltpu.CompilerParams(
            dimension_semantics=("parallel",)),
    )(inp_i16, gt_i16)


# ----------------------------------------------------------------------------
# Wrapper: 16-bit bitcast in, final lane reduction + tiny scalar math out.
# ----------------------------------------------------------------------------
def validate_forward(input_u16, gt_u16, with_psnr=True):
    # Keep the HBM->VMEM traffic at 2 bytes/element; the sign fix and the
    # 1/65536 scaling happen inside the kernel.
    inp_i16 = jax.lax.bitcast_convert_type(input_u16, jnp.int16)
    gt_i16 = jax.lax.bitcast_convert_type(gt_u16, jnp.int16)

    stats = _validate_stats(inp_i16, gt_i16)          # (N, 3, 128) lane partials
    sums = jnp.sum(stats, axis=-1) * (1.0 / (H * W))  # (N, 3) per-image means
    gt_mean = sums[:, 0]
    abs_diff = sums[:, 1]
    mse = sums[:, 2]

    # Final per-batch scalar math (tiny; plain JAX).  Note: like the original,
    # no epsilon guard on gt_mean (an all-zero gt image gives inf/NaN there too).
    weight = (1.0 / gt_mean) ** 0.5
    score = jnp.mean(abs_diff * weight)
    score = jnp.log10(100.0 / score) * 5.0

    if with_psnr:
        psnr = jnp.mean(20.0 * jnp.log10(65535.0 / jnp.sqrt(mse)))
        return score, psnr
    return score


if __name__ == "__main__":
    # Synthetic stand-ins for the .bin files loaded in __init__.
    # TODO(synk): original module reads burst_raw/*.bin from disk; replaced
    # with deterministic random uint16 images.
    key = jax.random.PRNGKey(0)
    k1, k2 = jax.random.split(key)
    N = 16
    inp_u16 = (jax.random.uniform(k1, (N, H, W)) * 65535.0).astype(jnp.uint16)
    gt_u16 = (jax.random.uniform(k2, (N, H, W)) * 65535.0).astype(jnp.uint16)

    fwd = jax.jit(validate_forward, static_argnames=("with_psnr",))
    score, psnr = fwd(inp_u16, gt_u16, with_psnr=True)
    jax.block_until_ready((score, psnr))
    print("KERNEL_OK")
</pallas_src>

<mosaic_0001>
module attributes {stable_mosaic.version = 11 : i64} {
  func.func @validate_kernel(%arg0: i32, %arg1: memref<16x128x128xi16, #tpu.memory_space<vmem>>, %arg2: memref<16x128x128xi16, #tpu.memory_space<vmem>>, %arg3: memref<16x3x128xf32, #tpu.memory_space<vmem>>) attributes {dimension_semantics = [#tpu.dimension_semantics<parallel>], iteration_bounds = array<i64: 1>, scalar_prefetch = 0 : i64, scratch_operands = 0 : i64, tpu.core_type = #tpu.core_type<tc>, window_params = [{transform_indices = @transform_0, window_bounds = array<i64: 16, 128, 128>}, {transform_indices = @transform_1, window_bounds = array<i64: 16, 128, 128>}, {transform_indices = @transform_2, window_bounds = array<i64: 16, 3, 128>}]} {
    %0 = tpu.iota {dimensions = array<i32: 0>} : vector<128x1xi32>
    %1 = tpu.iota {dimensions = array<i32: 1>} : vector<1x128xi32>
    %c127_i32 = arith.constant 127 : i32
    %2 = vector.broadcast %c127_i32 : i32 to vector<128x1xi32>
    %3 = arith.cmpi slt, %0, %2 : vector<128x1xi32>
    %c1_i32 = arith.constant 1 : i32
    %4 = vector.broadcast %c1_i32 : i32 to vector<128x1xi32>
    %5 = arith.cmpi sge, %0, %4 : vector<128x1xi32>
    %c127_i32_0 = arith.constant 127 : i32
    %6 = vector.broadcast %c127_i32_0 : i32 to vector<1x128xi32>
    %7 = arith.cmpi slt, %1, %6 : vector<1x128xi32>
    %c1_i32_1 = arith.constant 1 : i32
    %8 = vector.broadcast %c1_i32_1 : i32 to vector<1x128xi32>
    %9 = arith.cmpi sge, %1, %8 : vector<1x128xi32>
    %c0_i32 = arith.constant 0 : i32
    %c16_i32 = arith.constant 16 : i32
    %10 = arith.addi %c0_i32, %c16_i32 : i32
    %c1_i32_2 = arith.constant 1 : i32
    scf.for %arg4 = %c0_i32 to %10 step %c1_i32_2  : i32 {
      %c1_i32_4 = arith.constant 1 : i32
      %11 = arith.muli %arg4, %c1_i32_4 : i32
      %c0_i32_5 = arith.constant 0 : i32
      %12 = arith.addi %c0_i32_5, %11 : i32
      %13 = arith.index_cast %12 : i32 to index
      %c0 = arith.constant 0 : index
      %c0_6 = arith.constant 0 : index
      %14 = vector.load %arg1[%13, %c0, %c0_6] : memref<16x128x128xi16, #tpu.memory_space<vmem>>, vector<1x128x128xi16>
      %15 = vector.shape_cast %14 : vector<1x128x128xi16> to vector<128x128xi16>
      %16 = arith.extsi %15 : vector<128x128xi16> to vector<128x128xi32>
      %c65535_i32 = arith.constant 65535 : i32
      %17 = vector.broadcast %c65535_i32 : i32 to vector<128x128xi32>
      %18 = arith.andi %16, %17 : vector<128x128xi32>
      %19 = arith.sitofp %18 : vector<128x128xi32> to vector<128x128xf32>
      %cst = arith.constant 1.52587891E-5 : f32
      %20 = vector.broadcast %cst : f32 to vector<128x128xf32>
      %21 = arith.mulf %19, %20 : vector<128x128xf32>
      %c127_i32_7 = arith.constant 127 : i32
      %22 = tpu.dynamic_rotate %21 by %c127_i32_7 dim 0 : vector<128x128xf32>, i32 -> vector<128x128xf32>
      %c1_i32_8 = arith.constant 1 : i32
      %23 = tpu.dynamic_rotate %21 by %c1_i32_8 dim 0 : vector<128x128xf32>, i32 -> vector<128x128xf32>
      %cst_9 = arith.constant 0.000000e+00 : f32
      %24 = vector.shape_cast %3 : vector<128x1xi1> to vector<128x1xi1>
      %25 = vector.broadcast %24 : vector<128x1xi1> to vector<128x128xi1>
      %26 = vector.broadcast %cst_9 : f32 to vector<128x128xf32>
      %27 = arith.select %25, %22, %26 : vector<128x128xi1>, vector<128x128xf32>
      %cst_10 = arith.constant 2.000000e+00 : f32
      %28 = vector.broadcast %cst_10 : f32 to vector<128x128xf32>
      %29 = arith.mulf %28, %21 : vector<128x128xf32>
      %30 = arith.addf %27, %29 : vector<128x128xf32>
      %cst_11 = arith.constant 0.000000e+00 : f32
      %31 = vector.shape_cast %5 : vector<128x1xi1> to vector<128x1xi1>
      %32 = vector.broadcast %31 : vector<128x1xi1> to vector<128x128xi1>
      %33 = vector.broadcast %cst_11 : f32 to vector<128x128xf32>
      %34 = arith.select %32, %23, %33 : vector<128x128xi1>, vector<128x128xf32>
      %35 = arith.addf %30, %34 : vector<128x128xf32>
      %c127_i32_12 = arith.constant 127 : i32
      %36 = tpu.dynamic_rotate %35 by %c127_i32_12 dim 1 : vector<128x128xf32>, i32 -> vector<128x128xf32>
      %c1_i32_13 = arith.constant 1 : i32
      %37 = tpu.dynamic_rotate %35 by %c1_i32_13 dim 1 : vector<128x128xf32>, i32 -> vector<128x128xf32>
      %cst_14 = arith.constant 0.000000e+00 : f32
      %38 = vector.shape_cast %7 : vector<1x128xi1> to vector<1x128xi1>
      %39 = vector.broadcast %38 : vector<1x128xi1> to vector<128x128xi1>
      %40 = vector.broadcast %cst_14 : f32 to vector<128x128xf32>
      %41 = arith.select %39, %36, %40 : vector<128x128xi1>, vector<128x128xf32>
      %cst_15 = arith.constant 2.000000e+00 : f32
      %42 = vector.broadcast %cst_15 : f32 to vector<128x128xf32>
      %43 = arith.mulf %42, %35 : vector<128x128xf32>
      %44 = arith.addf %41, %43 : vector<128x128xf32>
      %cst_16 = arith.constant 0.000000e+00 : f32
      %45 = vector.shape_cast %9 : vector<1x128xi1> to vector<1x128xi1>
      %46 = vector.broadcast %45 : vector<1x128xi1> to vector<128x128xi1>
      %47 = vector.broadcast %cst_16 : f32 to vector<128x128xf32>
      %48 = arith.select %46, %37, %47 : vector<128x128xi1>, vector<128x128xf32>
      %49 = arith.addf %44, %48 : vector<128x128xf32>
      %cst_17 = arith.constant 5.000000e-02 : f32
      %50 = vector.broadcast %cst_17 : f32 to vector<128x128xf32>
      %51 = arith.mulf %50, %49 : vector<128x128xf32>
      %cst_18 = arith.constant 2.000000e-01 : f32
      %52 = vector.broadcast %cst_18 : f32 to vector<128x128xf32>
      %53 = arith.mulf %52, %21 : vector<128x128xf32>
      %54 = arith.addf %51, %53 : vector<128x128xf32>
      %cst_19 = arith.constant 1.000000e-03 : f32
      %55 = vector.broadcast %cst_19 : f32 to vector<128x128xf32>
      %56 = arith.addf %54, %55 : vector<128x128xf32>
      %cst_20 = arith.constant 6.553600e+04 : f32
      %57 = vector.broadcast %cst_20 : f32 to vector<128x128xf32>
      %58 = arith.mulf %56, %57 : vector<128x128xf32>
      %cst_21 = arith.constant 0.000000e+00 : f32
      %cst_22 = arith.constant 6.553500e+04 : f32
      %59 = vector.broadcast %cst_21 : f32 to vector<128x128xf32>
      %60 = arith.maximumf %59, %58 : vector<128x128xf32>
      %61 = vector.broadcast %cst_22 : f32 to vector<128x128xf32>
      %62 = arith.minimumf %61, %60 : vector<128x128xf32>
      %63 = math.floor %62 : vector<128x128xf32>
      %64 = arith.index_cast %12 : i32 to index
      %c0_23 = arith.constant 0 : index
      %c0_24 = arith.constant 0 : index
      %65 = vector.load %arg2[%64, %c0_23, %c0_24] : memref<16x128x128xi16, #tpu.memory_space<vmem>>, vector<1x128x128xi16>
      %66 = vector.shape_cast %65 : vector<1x128x128xi16> to vector<128x128xi16>
      %67 = arith.extsi %66 : vector<128x128xi16> to vector<128x128xi32>
      %c65535_i32_25 = arith.constant 65535 : i32
      %68 = vector.broadcast %c65535_i32_25 : i32 to vector<128x128xi32>
      %69 = arith.andi %67, %68 : vector<128x128xi32>
      %70 = arith.sitofp %69 : vector<128x128xi32> to vector<128x128xf32>
      %71 = arith.subf %63, %70 : vector<128x128xf32>
      %cst_26 = arith.constant dense<0.000000e+00> : vector<128xf32>
      %72 = vector.multi_reduction <add>, %70, %cst_26 [0] : vector<128x128xf32> to vector<128xf32>
      %73 = vector.shape_cast %72 : vector<128xf32> to vector<1x128xf32>
      %74 = math.absf %71 : vector<128x128xf32>
      %cst_27 = arith.constant dense<0.000000e+00> : vector<128xf32>
      %75 = vector.multi_reduction <add>, %74, %cst_27 [0] : vector<128x128xf32> to vector<128xf32>
      %76 = vector.shape_cast %75 : vector<128xf32> to vector<1x128xf32>
      %77 = arith.mulf %71, %71 : vector<128x128xf32>
      %cst_28 = arith.constant dense<0.000000e+00> : vector<128xf32>
      %78 = vector.multi_reduction <add>, %77, %cst_28 [0] : vector<128x128xf32> to vector<128xf32>
      %79 = vector.shape_cast %78 : vector<128xf32> to vector<1x128xf32>
      %80 = tpu.concatenate %73, %76, %79 in 0 : vector<1x128xf32>, vector<1x128xf32>, vector<1x128xf32> -> vector<3x128xf32>
      %81 = arith.index_cast %12 : i32 to index
      %c0_29 = arith.constant 0 : index
      %c0_30 = arith.constant 0 : index
      %82 = vector.load %arg3[%81, %c0_29, %c0_30] : memref<16x3x128xf32, #tpu.memory_space<vmem>>, vector<1x3x128xf32>
      %83 = vector.shape_cast %82 : vector<1x3x128xf32> to vector<3x128xf32>
      %84 = vector.shape_cast %80 : vector<3x128xf32> to vector<1x3x128xf32>
      tpu.vector_store %arg3[%81, %c0_29, %c0_30], %84 {strides = array<i32>} : memref<16x3x128xf32, #tpu.memory_space<vmem>>, vector<1x3x128xf32>,
    }
    %c16_i32_3 = arith.constant 16 : i32
    return
  }
  func.func @transform_0(%arg0: i32) -> (i32, i32, i32) {
    %c0_i32 = arith.constant 0 : i32
    %c0_i32_0 = arith.constant 0 : i32
    %c0_i32_1 = arith.constant 0 : i32
    return %arg0, %c0_i32, %c0_i32_0 : i32, i32, i32
  }
  func.func @transform_1(%arg0: i32) -> (i32, i32, i32) {
    %c0_i32 = arith.constant 0 : i32
    %c0_i32_0 = arith.constant 0 : i32
    %c0_i32_1 = arith.constant 0 : i32
    return %arg0, %c0_i32, %c0_i32_0 : i32, i32, i32
  }
  func.func @transform_2(%arg0: i32) -> (i32, i32, i32) {
    %c0_i32 = arith.constant 0 : i32
    %c0_i32_0 = arith.constant 0 : i32
    %c0_i32_1 = arith.constant 0 : i32
    return %arg0, %c0_i32, %c0_i32_0 : i32, i32, i32
  }
}

</mosaic_0001>

<bundles_post_ra>
// kernel: validate_forward.1
= control target key start
LH: loop header
LB: loop body
LE: loop exit
PB: predicated region body
PF: predicated region fallthrough
CT: control target
= control target key end

     0   :  { %v11_v0 = vlaneseq  ;;  %s968_s9 = smov 0   ;;  %s1563_s0 = inlined_call_operand.vmem [shape: s16[16,128,128], index: 0, kind: input, shape index: {}]   ;;  %s1564_s1 = inlined_call_operand.vmem [shape: s16[16,128,128], index: 1, kind: input, shape index: {}]   ;;  %s1565_s2 = inlined_call_operand.vmem [shape: f32[16,3,128], index: 2, kind: output, shape index: {}]  }
   0x2   :  { %v957_v1 = vshrl.u32 %v11_v0, 7  ;;  %v959_v2 = vand.u32 127, %v11_v0 }
   0x4   :  { %1584 = vst [vmem:[#allocation2_spill] sm:$0xff] %v957_v1  ;;  %v962_v3 = vadd.s32 120, %v957_v1  ;;  %vm46_vm0 = vcmp.ge.s32.totalorder %v957_v1, 1  ;;  %vm62_vm1 = vcmp.lt.s32.totalorder %v959_v2, 127  ;;  %vm63_vm2 = vcmp.ge.s32.totalorder %v959_v2, 1 }
   0x6   :  { %1585 = vst [vmem:[#allocation3_spill] sm:$0xff] %v962_v3  ;;  %vm45_vm3 = vcmp.lt.s32.totalorder %v962_v3, 127 }
   0x7 LB: > { %s842_s10 = sshll.u32 %s938_s9, 6  ;;  %s940_s14 = smov 127   ;;  %vm816_vm6 = vcmask 1040384   ;;  %vm818_vm7 = vcmask 1041408   ;;  %s938_s9 = sphi %s968_s9, %s69_s9  }
   0x8   : > { %s979_s13 = scalar_lea.vmem %s1563_s0, %s842_s10  ;;  %s941_s15 = smov 1  }
   0x9   : > { %v845_v4 = vld [vmem:[%s979_s13] sm:$0xff]   ;;  %v908_v5 = vld [vmem:[%s979_s13 + $0x8] sm:$0xff]   ;;  %v986_v6 = vld [vmem:[%s979_s13 + $0x38] sm:$0xff]   ;;  %s1256_s18 = scalar_lea.vmem %s1564_s1, %s842_s10  ;;  %s841_s19 = sshll.u32 %s938_s9, 2 }
   0xa   : > { %v847_v7 = vunpack.c.h.b16 %v845_v4  ;;  %v850_v8 = vunpack.c.l.b16 %v908_v5  ;;  %v851_v9 = vunpack.c.h.b16 %v908_v5  ;;  %v846_v10 = vunpack.c.l.b16 %v845_v4  ;;  %v909_v11 = vld [vmem:[%s979_s13 + $0x10] sm:$0xff]   ;;  %v990_v12 = vld [vmem:[%s979_s13 + $0x18] sm:$0xff]   ;;  %s821_s22 = scalar_lea.vmem %s1565_s2, %s841_s19  ;;  %s69_s9 = sadd.s32 1, %s938_s9  }
   0xb   : > { %v1586_v1 = vld [vmem:[#allocation2_spill] sm:$0xff]  ;;  %v875_v13 = vunpack.c.h.b16 %v986_v6  ;;  %v854_v14 = vunpack.c.l.b16 %v909_v11  ;;  %v855_v15 = vunpack.c.h.b16 %v909_v11  ;;  %v858_v16 = vunpack.c.l.b16 %v990_v12  ;;  %p66_p0 = scmp.ge.s32.totalorder %s69_s9, 16  }
   0xc   : > { %vm169_vm4 = vcmp.lt.s32.totalorder %v1586_v1, 7  ;;  %vm202_vm5 = vcmp.lt.s32.totalorder %v1586_v1, 1  ;;  %v106_v17 = vand.u32 65535, %v847_v7  ;;  %v107_v18 = vand.u32 65535, %v850_v8 }
   0xd   : > { %v108_v19 = vand.u32 65535, %v851_v9  ;;  %v105_v20 = vand.u32 65535, %v846_v10  ;;  %v120_v21 = vand.u32 65535, %v875_v13  ;;  %v109_v22 = vand.u32 65535, %v854_v14 }
   0xe   : > { %v110_v23 = vand.u32 65535, %v855_v15  ;;  %v111_v24 = vand.u32 65535, %v858_v16  ;;  %v122_v25 = vcvt.s32.f32 %v106_v17  ;;  %v123_v26 = vcvt.s32.f32 %v107_v18  ;;  %v911_v17 = vld [vmem:[%s979_s13 + $0x20] sm:$0xff]   ;;  %v912_v18 = vld [vmem:[%s979_s13 + $0x28] sm:$0xff]  }
   0xf   : > { %v124_v27 = vcvt.s32.f32 %v108_v19  ;;  %v121_v28 = vcvt.s32.f32 %v105_v20  ;;  %v136_v29 = vcvt.s32.f32 %v120_v21  ;;  %v125_v30 = vcvt.s32.f32 %v109_v22 }
  0x10   : > { %v126_v31 = vcvt.s32.f32 %v110_v23  ;;  %v127_v32 = vcvt.s32.f32 %v111_v24  ;;  %v994_v33 = vmul.f32 1.5258789e-05, %v122_v25  ;;  %v996_v34 = vmul.f32 1.5258789e-05, %v123_v26  ;;  %v913_v26 = vld [vmem:[%s979_s13 + $0x30] sm:$0xff]  }
  0x11   : > { %v998_v35 = vmul.f32 1.5258789e-05, %v124_v27  ;;  %v1000_v36 = vmul.f32 1.5258789e-05, %v121_v28  ;;  %v1002_v37 = vmul.f32 1.5258789e-05, %v136_v29  ;;  %v1004_v38 = vmul.f32 1.5258789e-05, %v125_v30 }
  0x12   : > { %v1006_v39 = vmul.f32 1.5258789e-05, %v126_v31  ;;  %v1008_v40 = vmul.f32 1.5258789e-05, %v127_v32  ;;  %v155_v41 = vrot.slane %v996_v34, 1  ;;  %v187_v43 = vrot.slane %v994_v33, 7 }
  0x13   : > { %v156_v42 = vrot.slane %v998_v35, 1  ;;  %v188_v44 = vrot.slane %v996_v34, 7  ;;  %v269_v45 = vmul.f32 2.0, %v996_v34  ;;  %v153_v46 = vrot.slane %v1000_v36, 1 }
  0x14   : > { %v154_v47 = vrot.slane %v994_v33, 1  ;;  %v186_v48 = vrot.slane %v1000_v36, 7  ;;  %v201_v51 = vrot.slane %v1002_v37, 7  ;;  %v267_v52 = vmul.f32 2.0, %v1000_v36 }
  0x15   : > { %v182_v49 = vsel %vm169_vm4, %v155_v41, %v156_v42  ;;  %v216_v50 = vsel %vm202_vm5, %v187_v43, %v188_v44  ;;  %v268_v59 = vmul.f32 2.0, %v994_v33  ;;  %v157_v60 = vrot.slane %v1004_v38, 1 }
  0x16   : > { %v285_v53 = vadd.f32 %v269_v45, %v182_v49  ;;  %v184_v54 = vsel %vm169_vm4, %v153_v46, %v154_v47  ;;  %v183_v55 = vsel %vm169_vm4, %v154_v47, %v155_v41  ;;  %v217_v56 = vsel %vm202_vm5, %v186_v48, %v187_v43 }
  0x17   : > { %v218_v57 = vsel %vm202_vm5, %v201_v51, %v186_v48  ;;  %v283_v58 = vadd.f32 %v267_v52, %v184_v54  ;;  %v189_v63 = vrot.slane %v998_v35, 7  ;;  %v270_v0 = vmul.f32 2.0, %v998_v35 }
  0x18   : > { %v1038_v61 = vadd.f32 %v285_v53, %v216_v50  ;;  %v331_v62 = vsel %vm46_vm0, %v218_v57, 0.0  ;;  %v284_v5 = vadd.f32 %v268_v59, %v183_v55  ;;  %v181_v7 = vsel %vm169_vm4, %v156_v42, %v157_v60 }
  0x19   : > { %v1044_v4 = vadd.f32 %v331_v62, %v283_v58  ;;  %v158_v8 = vrot.slane %v1006_v39, 1  ;;  %v215_v9 = vsel %vm202_vm5, %v188_v44, %v189_v63  ;;  %v286_v10 = vadd.f32 %v270_v0, %v181_v7 }
  0x1a   : > { %367 = vrot.lane.b32.xlu1 %v1038_v61, %s940_s14  ;;  %v190_v11 = vrot.slane %v1004_v38, 7  ;;  %v271_v13 = vmul.f32 2.0, %v1004_v38  ;;  %v1057_v14 = vadd.f32 %v284_v5, %v217_v56  ;;  %v159_v16 = vrot.slane %v1008_v40, 1 }
  0x1b   : > { %363 = vrot.lane.b32.xlu0 %v1044_v4, %s940_s14  ;;  %v180_v15 = vsel %vm169_vm4, %v157_v60, %v158_v8  ;;  %v1064_v19 = vadd.f32 %v286_v10, %v215_v9  ;;  %v191_v20 = vrot.slane %v1006_v39, 7  ;;  %v859_v21 = vunpack.c.h.b16 %v990_v12 }
  0x1c   : > { %v214_v22 = vsel %vm202_vm5, %v189_v63, %v190_v11  ;;  %v287_v23 = vadd.f32 %v271_v13, %v180_v15  ;;  %v272_v24 = vmul.f32 2.0, %v1006_v39  ;;  %v862_v25 = vunpack.c.l.b16 %v911_v17 }
  0x1d   : > { %v179_v27 = vsel %vm169_vm4, %v158_v8, %v159_v16  ;;  %v112_v28 = vand.u32 65535, %v859_v21  ;;  %v863_v12 = vunpack.c.h.b16 %v911_v17  ;;  %v866_v29 = vunpack.c.l.b16 %v912_v18 }
  0x1e   : > { %395 = vrot.lane.b32.xlu1 %v1044_v4, %s941_s15  ;;  %v192_v30 = vrot.slane %v1008_v40, 7  ;;  %v113_v31 = vand.u32 65535, %v862_v25  ;;  %v867_v32 = vunpack.c.h.b16 %v912_v18  ;;  %v870_v44 = vunpack.c.l.b16 %v913_v26 }
  0x1f   : > { %365 = vrot.lane.b32.xlu0 %v1057_v14, %s940_s14  ;;  %v128_v41 = vcvt.s32.f32 %v112_v28  ;;  %v114_v42 = vand.u32 65535, %v863_v12  ;;  %v115_v43 = vand.u32 65535, %v866_v29  ;;  %v1081_v45 = vadd.f32 %v287_v23, %v214_v22 }
  0x20   : > { %v288_v47 = vadd.f32 %v272_v24, %v179_v27  ;;  %v129_v48 = vcvt.s32.f32 %v113_v31  ;;  %v116_v49 = vand.u32 65535, %v867_v32  ;;  %v213_v50 = vsel %vm202_vm5, %v190_v11, %v191_v20 }
  0x21   : > { %v1087_v52 = vmul.f32 1.5258789e-05, %v128_v41  ;;  %v130_v53 = vcvt.s32.f32 %v114_v42  ;;  %v131_v54 = vcvt.s32.f32 %v115_v43  ;;  %v212_v55 = vsel %vm202_vm5, %v191_v20, %v192_v30 }
  0x22   : > { %369 = vrot.lane.b32.xlu1 %v1064_v19, %s940_s14  ;;  %v273_v56 = vmul.f32 2.0, %v1008_v40  ;;  %v1092_v57 = vmul.f32 1.5258789e-05, %v129_v48  ;;  %v117_v60 = vand.u32 65535, %v870_v44  ;;  %v871_v62 = vunpack.c.h.b16 %v913_v26 }
  0x23   : > { %397 = vrot.lane.b32.xlu0 %v1057_v14, %s941_s15  ;;  %v160_v58 = vrot.slane %v1087_v52, 1  ;;  %v1095_v59 = vmul.f32 1.5258789e-05, %v130_v53  ;;  %v1099_v63 = vadd.f32 %v288_v47, %v213_v50  ;;  %v274_v5 = vmul.f32 2.0, %v1087_v52 }
  0x24   : > { %v161_v0 = vrot.slane %v1092_v57, 1  ;;  %v132_v7 = vcvt.s32.f32 %v116_v49  ;;  %v193_v9 = vrot.slane %v1087_v52, 7  ;;  %v1109_v11 = vmul.f32 1.5258789e-05, %v131_v54 }
  0x25   : > { %v178_v8 = vsel %vm169_vm4, %v159_v16, %v160_v58  ;;  %v162_v10 = vrot.slane %v1095_v59, 1  ;;  %v133_v17 = vcvt.s32.f32 %v117_v60  ;;  %v118_v18 = vand.u32 65535, %v871_v62 }
  0x26   : > { %371 = vrot.lane.b32.xlu1 %v1081_v45, %s940_s14  ;;  %v289_v13 = vadd.f32 %v273_v56, %v178_v8  ;;  %v177_v15 = vsel %vm169_vm4, %v160_v58, %v161_v0  ;;  %v874_v20 = vunpack.c.l.b16 %v986_v6  ;;  %v194_v22 = vrot.slane %v1092_v57, 7 }
  0x27   : > { %399 = vrot.lane.b32.xlu0 %v1038_v61, %s941_s15  ;;  %v290_v16 = vadd.f32 %v274_v5, %v177_v15  ;;  %v275_v23 = vmul.f32 2.0, %v1092_v57  ;;  %v211_v24 = vsel %vm202_vm5, %v192_v30, %v193_v9  ;;  %v176_v25 = vsel %vm169_vm4, %v161_v0, %v162_v10 }
  0x28   : > { %v1116_v21 = vadd.f32 %v289_v13, %v212_v55  ;;  %v163_v6 = vrot.slane %v1109_v11, 1  ;;  %v1127_v26 = vmul.f32 1.5258789e-05, %v132_v7  ;;  %v195_v27 = vrot.slane %v1095_v59, 7 }
  0x29   : > { %v119_v28 = vand.u32 65535, %v874_v20  ;;  %v1132_v12 = vadd.f32 %v290_v16, %v211_v24  ;;  %v210_v29 = vsel %vm202_vm5, %v193_v9, %v194_v22  ;;  %v291_v31 = vadd.f32 %v275_v23, %v176_v25 }
  0x2a   : > { %373 = vrot.lane.b32.xlu1 %v1099_v63, %s940_s14  ;;  %v276_v30 = vmul.f32 2.0, %v1095_v59  ;;  %v175_v32 = vsel %vm169_vm4, %v162_v10, %v163_v6  ;;  %v164_v41 = vrot.slane %v1127_v26, 1  ;;  %v1142_v42 = vmul.f32 1.5258789e-05, %v133_v17 }
  0x2b   : > { %401 = vrot.lane.b32.xlu0 %v1064_v19, %s941_s15  ;;  %v134_v43 = vcvt.s32.f32 %v118_v18  ;;  %v209_v44 = vsel %vm202_vm5, %v194_v22, %v195_v27  ;;  %v1148_v47 = vadd.f32 %v291_v31, %v210_v29  ;;  %v196_v49 = vrot.slane %v1109_v11, 7 }
  0x2c   : > { %v292_v48 = vadd.f32 %v276_v30, %v175_v32  ;;  %v277_v50 = vmul.f32 2.0, %v1109_v11  ;;  %v174_v53 = vsel %vm169_vm4, %v163_v6, %v164_v41  ;;  %v165_v54 = vrot.slane %v1142_v42, 1 }
  0x2d   : > { %v1157_v55 = vmul.f32 1.5258789e-05, %v134_v43  ;;  %v135_v56 = vcvt.s32.f32 %v119_v28  ;;  %v197_v62 = vrot.slane %v1127_v26, 7  ;;  %v278_v0 = vmul.f32 2.0, %v1127_v26 }
  0x2e   : > { %375 = vrot.lane.b32.xlu1 %v1116_v21, %s940_s14  ;;  %v1161_v58 = vadd.f32 %v292_v48, %v209_v44  ;;  %v293_v60 = vadd.f32 %v277_v50, %v174_v53  ;;  %v208_v5 = vsel %vm202_vm5, %v195_v27, %v196_v49  ;;  %v173_v7 = vsel %vm169_vm4, %v164_v41, %v165_v54 }
  0x2f   : > { %403 = vrot.lane.b32.xlu0 %v1081_v45, %s941_s15  ;;  %v166_v8 = vrot.slane %v1157_v55, 1  ;;  %v1172_v9 = vmul.f32 1.5258789e-05, %v135_v56  ;;  %v294_v13 = vadd.f32 %v278_v0, %v173_v7  ;;  %v279_v15 = vmul.f32 2.0, %v1142_v42  ;;  %v915_v7 = vld [vmem:[%s1256_s18 + $0x8] sm:$0xff]  }
  0x30   : > { %v1176_v10 = vadd.f32 %v293_v60, %v208_v5  ;;  %v207_v17 = vsel %vm202_vm5, %v196_v49, %v197_v62  ;;  %v198_v20 = vrot.slane %v1142_v42, 7  ;;  %v280_v24 = vmul.f32 2.0, %v1157_v55 }
  0x31   : > { %v172_v18 = vsel %vm169_vm4, %v165_v54, %v166_v8  ;;  %v167_v16 = vrot.slane %v1172_v9, 1  ;;  %v1189_v22 = vadd.f32 %v294_v13, %v207_v17  ;;  %v199_v27 = vrot.slane %v1157_v55, 7 }
  0x32   : > { %377 = vrot.lane.b32.xlu1 %v1132_v12, %s940_s14  ;;  %v295_v23 = vadd.f32 %v279_v15, %v172_v18  ;;  %v206_v25 = vsel %vm202_vm5, %v197_v62, %v198_v20  ;;  %v168_v28 = vrot.slane %v1002_v37, 1  ;;  %v281_v30 = vmul.f32 2.0, %v1172_v9 }
  0x33   : > { %405 = vrot.lane.b32.xlu0 %v1099_v63, %s941_s15  ;;  %v171_v6 = vsel %vm169_vm4, %v166_v8, %v167_v16  ;;  %v205_v32 = vsel %vm202_vm5, %v198_v20, %v199_v27  ;;  %v200_v43 = vrot.slane %v1172_v9, 7  ;;  %v282_v50 = vmul.f32 2.0, %v1002_v37 }
  0x34   : > { %v1202_v29 = vadd.f32 %v295_v23, %v206_v25  ;;  %v296_v31 = vadd.f32 %v280_v24, %v171_v6  ;;  %v170_v41 = vsel %vm169_vm4, %v167_v16, %v168_v28  ;;  %v185_v44 = vsel %vm169_vm4, %v168_v28, %v153_v46  ;;  %v916_v23 = vld [vmem:[%s1256_s18 + $0x10] sm:$0xff]  }
  0x35   : > { %v297_v49 = vadd.f32 %v281_v30, %v170_v41  ;;  %v204_v53 = vsel %vm202_vm5, %v199_v27, %v200_v43  ;;  %v266_v54 = vsel %vm45_vm3, %v185_v44, 0.0  ;;  %v203_v60 = vsel %vm202_vm5, %v200_v43, %v201_v51  ;;  %v877_v51 = vld [vmem:[%s1256_s18] sm:$0xff]   ;;  %v917_v41 = vld [vmem:[%s1256_s18 + $0x18] sm:$0xff]  }
  0x36   : > { %379 = vrot.lane.b32.xlu1 %v1148_v47, %s940_s14  ;;  %v1218_v48 = vadd.f32 %v296_v31, %v205_v32  ;;  %v298_v56 = vadd.f32 %v282_v50, %v266_v54  ;;  %v878_v0 = vunpack.c.l.b16 %v877_v51  ;;  %v879_v5 = vunpack.c.h.b16 %v877_v51  ;;  %v918_v51 = vld [vmem:[%s1256_s18 + $0x20] sm:$0xff]  }
  0x37   : > { %407 = vrot.lane.b32.xlu0 %v1116_v21, %s941_s15  ;;  %v1229_v46 = vadd.f32 %v297_v49, %v204_v53  ;;  %v882_v15 = vunpack.c.l.b16 %v915_v7  ;;  %v883_v16 = vunpack.c.h.b16 %v915_v7  ;;  %v886_v27 = vunpack.c.l.b16 %v916_v23 }
  0x38   : > { %v1239_v62 = vadd.f32 %v298_v56, %v203_v60  ;;  %v1260_v8 = vand.u32 65535, %v878_v0  ;;  %v1262_v13 = vand.u32 65535, %v879_v5  ;;  %v887_v32 = vunpack.c.h.b16 %v916_v23 }
  0x39   : > { %v1266_v20 = vand.u32 65535, %v882_v15  ;;  %v1274_v6 = vand.u32 65535, %v883_v16  ;;  %v1279_v30 = vand.u32 65535, %v886_v27  ;;  %v890_v50 = vunpack.c.l.b16 %v917_v41 }
  0x3a   : > { %381 = vrot.lane.b32.xlu1 %v1161_v58, %s940_s14  ;;  %v1574_v17 = vcvt.s32.f32 %v1260_v8  ;;  %v1573_v18 = vcvt.s32.f32 %v1262_v13  ;;  %v1285_v49 = vand.u32 65535, %v887_v32  ;;  %v891_v60 = vunpack.c.h.b16 %v917_v41 }
  0x3b   : > { %409 = vrot.lane.b32.xlu0 %v1132_v12, %s941_s15  ;;  %v1572_v25 = vcvt.s32.f32 %v1266_v20  ;;  %v1570_v31 = vcvt.s32.f32 %v1274_v6  ;;  %v1568_v44 = vcvt.s32.f32 %v1279_v30  ;;  %v1290_v56 = vand.u32 65535, %v890_v50 }
  0x3c   : > { %v721_v24 = vadd.f32 %v1573_v18, %v1574_v17  ;;  %v1566_v54 = vcvt.s32.f32 %v1285_v49  ;;  %v1296_v7 = vand.u32 65535, %v891_v60  ;;  %v894_v15 = vunpack.c.l.b16 %v918_v51  ;;  %v919_v60 = vld [vmem:[%s1256_s18 + $0x28] sm:$0xff]  }
  0x3d   : > { %v1567_v5 = vcvt.s32.f32 %v1290_v56  ;;  %v895_v32 = vunpack.c.h.b16 %v918_v51  ;;  %v447_v41 = vmul.f32 2.0, %v1038_v61  ;;  %v527_v50 = vmul.f32 0.2, %v1000_v36 }
  0x3e   : > { %383 = vrot.lane.b32.xlu1 %v1176_v10, %s940_s14  ;;  %v722_v28 = vadd.f32 %v721_v24, %v1572_v25  ;;  %v445_v24 = vmul.f32 2.0, %v1044_v4  ;;  %v1569_v27 = vcvt.s32.f32 %v1296_v7  ;;  %v528_v4 = vmul.f32 0.2, %v994_v33 }
  0x3f   : > { %411 = vrot.lane.b32.xlu0 %v1148_v47, %s941_s15  ;;  %v1317_v51 = vmul.f32 2.0, %v1081_v45  ;;  %v1320_v61 = vmul.f32 0.2, %v996_v34  ;;  %v1323_v36 = vmul.f32 2.0, %v1099_v63  ;;  %v1329_v33 = vand.u32 65535, %v895_v32 }
  0x40   : > { %v723_v43 = vadd.f32 %v722_v28, %v1570_v31  ;;  %v1302_v28 = vand.u32 65535, %v894_v15  ;;  %v1334_v34 = vmul.f32 2.0, %v1116_v21  ;;  %v1337_v63 = vmul.f32 0.2, %v1004_v38 }
  0x41   : > { %v1345_v32 = vmul.f32 0.2, %v1006_v39  ;;  %v1350_v21 = vmul.f32 2.0, %v1148_v47  ;;  %v1353_v38 = vmul.f32 0.2, %v1008_v40  ;;  %v1575_v39 = vcvt.s32.f32 %v1329_v33 }
  0x42   : > { %385 = vrot.lane.b32.xlu1 %v1189_v22, %s940_s14  ;;  %v724_v53 = vadd.f32 %v723_v43, %v1568_v44  ;;  %v898_v44 = vunpack.c.l.b16 %v919_v60  ;;  %v899_v31 = vunpack.c.h.b16 %v919_v60  ;;  %v1365_v47 = vmul.f32 2.0, %v1176_v10 }
  0x43   : > { %413 = vrot.lane.b32.xlu0 %v1161_v58, %s941_s15  ;;  %v1368_v40 = vmul.f32 0.2, %v1092_v57  ;;  %v1384_v57 = vmul.f32 2.0, %v1202_v29 }
  0x44   : > { %v725_v0 = vadd.f32 %v724_v53, %v1566_v54  ;;  %v446_v53 = vmul.f32 2.0, %v1057_v14  ;;  %v1326_v14 = vmul.f32 0.2, %v998_v35  ;;  %v1340_v35 = vmul.f32 2.0, %v1132_v12 }
  0x45   : > { %v1356_v12 = vmul.f32 2.0, %v1161_v58  ;;  %v1371_v58 = vmul.f32 2.0, %v1189_v22 }
  0x46   : > { %387 = vrot.lane.b32.xlu1 %v1202_v29, %s940_s14  ;;  %v726_v16 = vadd.f32 %v725_v0, %v1567_v5  ;;  %v1311_v0 = vmul.f32 2.0, %v1064_v19  ;;  %v1571_v5 = vcvt.s32.f32 %v1302_v28 }
  0x47   : > { %415 = vrot.lane.b32.xlu0 %v1176_v10, %s941_s15  ;;  %v1381_v10 = vmul.f32 0.2, %v1095_v59  ;;  %v1396_v59 = vmul.f32 0.2, %v1127_v26 }
  0x48   : > { %v727_v15 = vadd.f32 %v726_v16, %v1569_v27  ;;  %v1362_v27 = vand.u32 65535, %v898_v44 }
  0x4a   : > { %389 = vrot.lane.b32.xlu1 %v1218_v48, %s940_s14 }
  0x4b   : > { %417 = vrot.lane.b32.xlu0 %v1189_v22, %s941_s15  ;;  %v1387_v22 = vmul.f32 0.2, %v1109_v11 }
  0x4e   : > { %391 = vrot.lane.b32.xlu1 %v1229_v46, %s940_s14 }
  0x4f   : > { %419 = vrot.lane.b32.xlu0 %v1202_v29, %s941_s15 }
  0x52   : > { %393 = vrot.lane.b32.xlu1 %v1239_v62, %s940_s14 }
  0x53   : > { %421 = vrot.lane.b32.xlu0 %v1218_v48, %s941_s15 }
  0x56   : > { %425 = vrot.lane.b32.xlu1 %v1239_v62, %s941_s15 }
  0x57   : > { %423 = vrot.lane.b32.xlu0 %v1229_v46, %s941_s15 }
  0x8c   : > { %v368_v23 = vpop.permute.xlu1 %367 }
  0x8d   : > { %v364_v43 = vpop.permute.xlu0 %363 }
  0x8e   : > { %v429_v54 = vsel %vm62_vm1, %v364_v43, 0.0 }
  0x8f   : > { %v461_v43 = vadd.f32 %v445_v24, %v429_v54 }
  0x90   : > { %v396_v19 = vpop.permute.xlu1 %395 }
  0x91   : > { %v479_v45 = vsel %vm63_vm2, %v396_v19, 0.0  ;;  %v366_v16 = vpop.permute.xlu0 %365  ;;  %v728_v19 = vadd.f32 %v727_v15, %v1571_v5 }
  0x92   : > { %v495_v54 = vadd.f32 %v479_v45, %v461_v43  ;;  %v430_v24 = vsel %vm62_vm1, %v366_v16, 0.0  ;;  %v1359_v43 = vmul.f32 0.2, %v1087_v52  ;;  %v920_v52 = vld [vmem:[%s1256_s18 + $0x30] sm:$0xff]  }
  0x93   : > { %v462_v15 = vadd.f32 %v446_v53, %v430_v24  ;;  %v729_v53 = vadd.f32 %v728_v19, %v1575_v39 }
  0x94   : > { %v511_v45 = vmul.f32 0.05, %v495_v54  ;;  %v370_v16 = vpop.permute.xlu1 %369  ;;  %v431_v54 = vsel %vm62_vm1, %v368_v23, 0.0  ;;  %v1581_v23 = vcvt.s32.f32 %v1362_v27 }
  0x95   : > { %v398_v5 = vpop.permute.xlu0 %397  ;;  %v432_v11 = vsel %vm62_vm1, %v370_v16, 0.0  ;;  %v903_v16 = vunpack.c.h.b16 %v920_v52 }
  0x96   : > { %v543_v25 = vadd.f32 %v527_v50, %v511_v45  ;;  %v480_v44 = vsel %vm63_vm2, %v398_v5, 0.0  ;;  %v1390_v50 = vand.u32 65535, %v899_v31  ;;  %v902_v5 = vunpack.c.l.b16 %v920_v52 }
  0x97   : > { %v496_v60 = vadd.f32 %v480_v44, %v462_v15  ;;  %v463_v45 = vadd.f32 %v447_v41, %v431_v54  ;;  %v1393_v15 = vmul.f32 2.0, %v1218_v48  ;;  %v730_v31 = vadd.f32 %v729_v53, %v1581_v23 }
  0x98   : > { %v559_v24 = vadd.f32 0.001, %v543_v25  ;;  %v372_v18 = vpop.permute.xlu1 %371  ;;  %v1405_v54 = vmul.f32 2.0, %v1229_v46  ;;  %v1408_v48 = vmul.f32 0.2, %v1142_v42  ;;  %v1411_v39 = vand.u32 65535, %v902_v5 }
  0x99   : > { %v512_v17 = vmul.f32 0.05, %v496_v60  ;;  %v400_v19 = vpop.permute.xlu0 %399  ;;  %v433_v42 = vsel %vm62_vm1, %v372_v18, 0.0  ;;  %v1431_v18 = vmul.f32 0.2, %v1002_v37 }
  0x9a   : > { %v575_v29 = vmul.f32 65536.0, %v559_v24  ;;  %v481_v25 = vsel %vm63_vm2, %v400_v19, 0.0  ;;  %v1580_v24 = vcvt.s32.f32 %v1390_v50  ;;  %v464_v19 = vadd.f32 %v1311_v0, %v432_v11 }
  0x9b   : > { %v544_v44 = vadd.f32 %v528_v4, %v512_v17  ;;  %v497_v41 = vadd.f32 %v481_v25, %v463_v45  ;;  %v1415_v17 = vmul.f32 2.0, %v1239_v62  ;;  %v1579_v25 = vcvt.s32.f32 %v1411_v39 }
  0x9c   : > { %v591_v26 = vmax.f32 %v575_v29, 0.0  ;;  %v374_v60 = vpop.permute.xlu1 %373  ;;  %v731_v5 = vadd.f32 %v730_v31, %v1580_v24  ;;  %v1425_v29 = vmul.f32 0.2, %v1157_v55  ;;  %v1589_v55 = vcvt.s32.f32 %v1260_v8 }
  0x9d   : > { %v560_v1 = vadd.f32 0.001, %v544_v44  ;;  %v513_v3 = vmul.f32 0.05, %v497_v41  ;;  %v402_v53 = vpop.permute.xlu0 %401  ;;  %v1428_v44 = vand.u32 65535, %v903_v16 }
  0x9e   : > { %v607_v46 = vmin.f32 %v591_v26, 65535.0  ;;  %v482_v4 = vsel %vm63_vm2, %v402_v53, 0.0  ;;  %v465_v26 = vadd.f32 %v1317_v51, %v433_v42  ;;  %v732_v37 = vadd.f32 %v731_v5, %v1579_v25 }
  0x9f   : > { %v576_v52 = vmul.f32 65536.0, %v560_v1  ;;  %v545_v0 = vadd.f32 %v1320_v61, %v513_v3  ;;  %v498_v45 = vadd.f32 %v482_v4, %v464_v19  ;;  %1588 = vst [vmem:[#allocation4_spill] sm:$0xff] %v1428_v44  ;;  %v1435_v3 = vld [vmem:[%s1256_s18 + $0x38] sm:$0xff]   ;;  %v434_v19 = vsel %vm62_vm1, %v374_v60, 0.0 }
  0xa0   : > { %v623_v62 = vfloor.f32 %v607_v46  ;;  %v376_v11 = vpop.permute.xlu1 %375  ;;  %v1582_v8 = vcvt.s32.f32 %v1428_v44  ;;  %v1451_v60 = vmul.f32 0.2, %v1172_v9 }
  0xa1   : > { %v592_v41 = vmax.f32 %v576_v52, 0.0  ;;  %v561_v31 = vadd.f32 0.001, %v545_v0  ;;  %v514_v1 = vmul.f32 0.05, %v498_v45  ;;  %v404_v53 = vpop.permute.xlu0 %403  ;;  %v435_v52 = vsel %vm62_vm1, %v376_v11, 0.0 }
  0xa2   : > { %v705_v61 = vsub.f32 %v623_v62, %v1589_v55  ;;  %v483_v16 = vsel %vm63_vm2, %v404_v53, 0.0  ;;  %v907_v45 = vunpack.c.h.b16 %v1435_v3  ;;  %v1458_v11 = vadd.f32 %v732_v37, %v1582_v8 }
  0xa3   : > { %v608_v46 = vmin.f32 %v592_v41, 65535.0  ;;  %v577_v4 = vmul.f32 65536.0, %v561_v31  ;;  %v546_v51 = vadd.f32 %v1326_v14, %v514_v1  ;;  %v499_v42 = vadd.f32 %v483_v16, %v465_v26 }
  0xa4   : > { %v378_v0 = vpop.permute.xlu1 %377  ;;  %v466_v31 = vadd.f32 %v1323_v36, %v434_v19  ;;  %v906_v26 = vunpack.c.l.b16 %v1435_v3  ;;  %v1590_v1 = vcvt.s32.f32 %v1262_v13  ;;  %v467_v36 = vadd.f32 %v1334_v34, %v435_v52 }
  0xa5   : > { %v624_v62 = vfloor.f32 %v608_v46  ;;  %v593_v53 = vmax.f32 %v577_v4, 0.0  ;;  %v562_v55 = vadd.f32 0.001, %v546_v51  ;;  %v515_v5 = vmul.f32 0.05, %v499_v42  ;;  %v406_v41 = vpop.permute.xlu0 %405 }
  0xa6   : > { %v484_v14 = vsel %vm63_vm2, %v406_v41, 0.0  ;;  %v742_v51 = vand.u32 2147483647, %v705_v61  ;;  %v779_v42 = vmul.f32 %v705_v61, %v705_v61  ;;  %v436_v13 = vsel %vm62_vm1, %v378_v0, 0.0 }
  0xa7   : > { %v706_v9 = vsub.f32 %v624_v62, %v1590_v1  ;;  %v609_v16 = vmin.f32 %v593_v53, 65535.0  ;;  %v578_v46 = vmul.f32 65536.0, %v562_v55  ;;  %v547_v4 = vadd.f32 %v1337_v63, %v515_v5 }
  0xa8   : > { %v500_v19 = vadd.f32 %v484_v14, %v466_v31  ;;  %v380_v25 = vpop.permute.xlu1 %379  ;;  %v1591_v61 = vcvt.s32.f32 %v1266_v20 }
  0xa9   : > { %v743_v41 = vand.u32 2147483647, %v706_v9  ;;  %v780_v24 = vmul.f32 %v706_v9, %v706_v9  ;;  %v625_v23 = vfloor.f32 %v609_v16  ;;  %v594_v37 = vmax.f32 %v578_v46, 0.0  ;;  %v408_v8 = vpop.permute.xlu0 %407 }
  0xaa   : > { %v563_v44 = vadd.f32 0.001, %v547_v4  ;;  %v516_v62 = vmul.f32 0.05, %v500_v19  ;;  %v485_v53 = vsel %vm63_vm2, %v408_v8, 0.0  ;;  %v1472_v9 = vand.u32 65535, %v907_v45 }
  0xab   : > { %v758_v63 = vadd.f32 %v743_v41, %v742_v51  ;;  %v795_v55 = vadd.f32 %v780_v24, %v779_v42  ;;  %v707_v34 = vsub.f32 %v625_v23, %v1591_v61  ;;  %v610_v52 = vmin.f32 %v594_v37, 65535.0 }
  0xac   : > { %v579_v5 = vmul.f32 65536.0, %v563_v44  ;;  %v548_v31 = vadd.f32 %v1345_v32, %v516_v62  ;;  %v501_v14 = vadd.f32 %v485_v53, %v467_v36  ;;  %v382_v1 = vpop.permute.xlu1 %381  ;;  %v468_v4 = vadd.f32 %v1340_v35, %v436_v13 }
  0xad   : > { %v744_v16 = vand.u32 2147483647, %v707_v34  ;;  %v781_v46 = vmul.f32 %v707_v34, %v707_v34  ;;  %v626_v0 = vfloor.f32 %v610_v52  ;;  %v410_v19 = vpop.permute.xlu0 %409  ;;  %v437_v20 = vsel %vm62_vm1, %v380_v25, 0.0 }
  0xae   : > { %v595_v8 = vmax.f32 %v579_v5, 0.0  ;;  %v564_v51 = vadd.f32 0.001, %v548_v31  ;;  %v517_v23 = vmul.f32 0.05, %v501_v14  ;;  %v1592_v32 = vcvt.s32.f32 %v1274_v6 }
  0xaf   : > { %v759_v24 = vadd.f32 %v758_v63, %v744_v16  ;;  %v796_v44 = vadd.f32 %v795_v55, %v781_v46  ;;  %v486_v45 = vsel %vm63_vm2, %v410_v19, 0.0  ;;  %v469_v61 = vadd.f32 %v1350_v21, %v437_v20 }
  0xb0   : > { %v708_v42 = vsub.f32 %v626_v0, %v1592_v32  ;;  %v611_v36 = vmin.f32 %v595_v8, 65535.0  ;;  %v580_v41 = vmul.f32 65536.0, %v564_v51  ;;  %v549_v37 = vadd.f32 %v1353_v38, %v517_v23  ;;  %v384_v13 = vpop.permute.xlu1 %383 }
  0xb1   : > { %v502_v35 = vadd.f32 %v486_v45, %v468_v4  ;;  %v438_v25 = vsel %vm62_vm1, %v382_v1, 0.0  ;;  %v412_v63 = vpop.permute.xlu0 %411  ;;  %v439_v14 = vsel %vm62_vm1, %v384_v13, 0.0  ;;  %v1593_v16 = vcvt.s32.f32 %v1279_v30 }
  0xb2   : > { %v745_v62 = vand.u32 2147483647, %v708_v42  ;;  %v782_v53 = vmul.f32 %v708_v42, %v708_v42  ;;  %v627_v55 = vfloor.f32 %v611_v36  ;;  %v596_v6 = vmax.f32 %v580_v41, 0.0 }
  0xb3   : > { %v565_v34 = vadd.f32 0.001, %v549_v37  ;;  %v518_v52 = vmul.f32 0.05, %v502_v35  ;;  %v487_v38 = vsel %vm63_vm2, %v412_v63, 0.0  ;;  %v470_v19 = vadd.f32 %v1356_v12, %v438_v25 }
  0xb4   : > { %v760_v5 = vadd.f32 %v759_v24, %v745_v62  ;;  %v797_v31 = vadd.f32 %v796_v44, %v782_v53  ;;  %v709_v46 = vsub.f32 %v627_v55, %v1593_v16  ;;  %v612_v21 = vmin.f32 %v596_v6, 65535.0  ;;  %v386_v4 = vpop.permute.xlu1 %385 }
  0xb5   : > { %v581_v0 = vmul.f32 65536.0, %v565_v34  ;;  %v550_v1 = vadd.f32 %v1359_v43, %v518_v52  ;;  %v503_v8 = vadd.f32 %v487_v38, %v469_v61  ;;  %v440_v51 = vsel %vm62_vm1, %v386_v4, 0.0  ;;  %v414_v20 = vpop.permute.xlu0 %413 }
  0xb6   : > { %v1497_v23 = vand.u32 65535, %v906_v26  ;;  %v746_v24 = vand.u32 2147483647, %v709_v46  ;;  %v783_v44 = vmul.f32 %v709_v46, %v709_v46  ;;  %v628_v30 = vfloor.f32 %v612_v21 }
  0xb7   : > { %v597_v32 = vmax.f32 %v581_v0, 0.0  ;;  %v566_v42 = vadd.f32 0.001, %v550_v1  ;;  %v471_v45 = vadd.f32 %v1365_v47, %v439_v14  ;;  %v519_v43 = vmul.f32 0.05, %v503_v8 }
  0xb8   : > { %v488_v12 = vsel %vm63_vm2, %v414_v20, 0.0  ;;  %v761_v36 = vadd.f32 %v760_v5, %v746_v24  ;;  %v798_v41 = vadd.f32 %v797_v31, %v783_v44  ;;  %v1594_v37 = vcvt.s32.f32 %v1285_v49  ;;  %v388_v3 = vpop.permute.xlu1 %387 }
  0xb9   : > { %v613_v13 = vmin.f32 %v597_v32, 65535.0  ;;  %v582_v26 = vmul.f32 65536.0, %v566_v42  ;;  %v551_v62 = vadd.f32 %v1368_v40, %v519_v43  ;;  %v472_v53 = vadd.f32 %v1371_v58, %v440_v51  ;;  %v416_v25 = vpop.permute.xlu0 %415 }
  0xba   : > { %v710_v35 = vsub.f32 %v628_v30, %v1594_v37  ;;  %v504_v61 = vadd.f32 %v488_v12, %v470_v19  ;;  %v441_v6 = vsel %vm62_vm1, %v388_v3, 0.0  ;;  %v489_v49 = vsel %vm63_vm2, %v416_v25, 0.0 }
  0xbb   : > { %v629_v55 = vfloor.f32 %v613_v13  ;;  %v598_v34 = vmax.f32 %v582_v26, 0.0  ;;  %v567_v52 = vadd.f32 0.001, %v551_v62  ;;  %v1595_v40 = vcvt.s32.f32 %v1290_v56 }
  0xbc   : > { %v747_v63 = vand.u32 2147483647, %v710_v35  ;;  %v784_v47 = vmul.f32 %v710_v35, %v710_v35  ;;  %v520_v5 = vmul.f32 0.05, %v504_v61  ;;  %v505_v58 = vadd.f32 %v489_v49, %v471_v45  ;;  %v390_v16 = vpop.permute.xlu1 %389 }
  0xbd   : > { %v711_v38 = vsub.f32 %v629_v55, %v1595_v40  ;;  %v614_v46 = vmin.f32 %v598_v34, 65535.0  ;;  %v583_v21 = vmul.f32 65536.0, %v567_v52  ;;  %v473_v1 = vadd.f32 %v1384_v57, %v441_v6  ;;  %v418_v4 = vpop.permute.xlu0 %417 }
  0xbe   : > { %v762_v31 = vadd.f32 %v761_v36, %v747_v63  ;;  %v799_v14 = vadd.f32 %v798_v41, %v784_v47  ;;  %v552_v0 = vadd.f32 %v1381_v10, %v520_v5  ;;  %v521_v51 = vmul.f32 0.05, %v505_v58 }
  0xbf   : > { %v748_v19 = vand.u32 2147483647, %v711_v38  ;;  %v785_v8 = vmul.f32 %v711_v38, %v711_v38  ;;  %v442_v20 = vsel %vm62_vm1, %v390_v16, 0.0  ;;  %v630_v24 = vfloor.f32 %v614_v46 }
  0xc0   : > { %v599_v44 = vmax.f32 %v583_v21, 0.0  ;;  %v568_v30 = vadd.f32 0.001, %v552_v0  ;;  %v490_v56 = vsel %vm63_vm2, %v418_v4, 0.0  ;;  %v553_v45 = vadd.f32 %v1387_v22, %v521_v51  ;;  %v392_v43 = vpop.permute.xlu1 %391 }
  0xc1   : > { %v763_v32 = vadd.f32 %v762_v31, %v748_v19  ;;  %v800_v42 = vadd.f32 %v799_v14, %v785_v8  ;;  %v506_v10 = vadd.f32 %v490_v56, %v472_v53  ;;  %v1596_v57 = vcvt.s32.f32 %v1296_v7  ;;  %v420_v35 = vpop.permute.xlu0 %419 }
  0xc2   : > { %v615_v36 = vmin.f32 %v599_v44, 65535.0  ;;  %v584_v41 = vmul.f32 65536.0, %v568_v30  ;;  %v443_v37 = vsel %vm62_vm1, %v392_v43, 0.0  ;;  %v569_v13 = vadd.f32 0.001, %v553_v45 }
  0xc3   : > { %v712_v12 = vsub.f32 %v630_v24, %v1596_v57  ;;  %v474_v3 = vadd.f32 %v1393_v15, %v442_v20  ;;  %v522_v26 = vmul.f32 0.05, %v506_v10  ;;  %v491_v62 = vsel %vm63_vm2, %v420_v35, 0.0 }
  0xc4   : > { %v631_v53 = vfloor.f32 %v615_v36  ;;  %v600_v25 = vmax.f32 %v584_v41, 0.0  ;;  %v585_v63 = vmul.f32 65536.0, %v569_v13  ;;  %v475_v47 = vadd.f32 %v1405_v54, %v443_v37  ;;  %v394_v6 = vpop.permute.xlu1 %393 }
  0xc5   : > { %v749_v61 = vand.u32 2147483647, %v712_v12  ;;  %v786_v22 = vmul.f32 %v712_v12, %v712_v12  ;;  %v554_v7 = vadd.f32 %v1396_v59, %v522_v26  ;;  %v507_v55 = vadd.f32 %v491_v62, %v473_v1  ;;  %v422_v31 = vpop.permute.xlu0 %421 }
  0xc6   : > { %v1597_v5 = vcvt.s32.f32 %v1302_v28  ;;  %v616_v49 = vmin.f32 %v600_v25, 65535.0  ;;  %v601_v14 = vmax.f32 %v585_v63, 0.0  ;;  %v444_v58 = vsel %vm62_vm1, %v394_v6, 0.0 }
  0xc7   : > { %v764_v34 = vadd.f32 %v763_v32, %v749_v61  ;;  %v801_v52 = vadd.f32 %v800_v42, %v786_v22  ;;  %v570_v40 = vadd.f32 0.001, %v554_v7  ;;  %v523_v38 = vmul.f32 0.05, %v507_v55 }
  0xc8   : > { %v713_v15 = vsub.f32 %v631_v53, %v1597_v5  ;;  %v632_v59 = vfloor.f32 %v616_v49  ;;  %v476_v54 = vadd.f32 %v1415_v17, %v444_v58  ;;  %v617_v21 = vmin.f32 %v601_v14, 65535.0  ;;  %v426_v4 = vpop.permute.xlu1 %425 }
  0xc9   : > { %v586_v0 = vmul.f32 65536.0, %v570_v40  ;;  %v555_v1 = vadd.f32 %v1408_v48, %v523_v38  ;;  %v492_v28 = vsel %vm63_vm2, %v422_v31, 0.0  ;;  %v1598_v51 = vcvt.s32.f32 %v1329_v33  ;;  %v424_v44 = vpop.permute.xlu0 %423 }
  0xca   : > { %v750_v16 = vand.u32 2147483647, %v713_v15  ;;  %v787_v46 = vmul.f32 %v713_v15, %v713_v15  ;;  %v508_v24 = vadd.f32 %v492_v28, %v474_v3  ;;  %v633_v30 = vfloor.f32 %v617_v21 }
  0xcb   : > { %v714_v20 = vsub.f32 %v632_v59, %v1598_v51  ;;  %v602_v56 = vmax.f32 %v586_v0, 0.0  ;;  %v571_v32 = vadd.f32 0.001, %v555_v1  ;;  %v494_v17 = vsel %vm63_vm2, %v426_v4, 0.0  ;;  %v1602_v51 = vld [vmem:[#allocation4_spill] sm:$0xff] }
  0xcc   : > { %v765_v19 = vadd.f32 %v764_v34, %v750_v16  ;;  %v802_v8 = vadd.f32 %v801_v52, %v787_v46  ;;  %v524_v48 = vmul.f32 0.05, %v508_v24  ;;  %v510_v10 = vadd.f32 %v494_v17, %v476_v54 }
  0xcd   : > { %v751_v42 = vand.u32 2147483647, %v714_v20  ;;  %v788_v45 = vmul.f32 %v714_v20, %v714_v20  ;;  %v1599_v43 = vcvt.s32.f32 %v1362_v27  ;;  %v618_v12 = vmin.f32 %v602_v56, 65535.0 }
  0xce   : > { %v587_v36 = vmul.f32 65536.0, %v571_v32  ;;  %v493_v33 = vsel %vm63_vm2, %v424_v44, 0.0  ;;  %v556_v35 = vadd.f32 %v1425_v29, %v524_v48  ;;  %v526_v13 = vmul.f32 0.05, %v510_v10 }
  0xcf   : > { %v715_v57 = vsub.f32 %v633_v30, %v1599_v43  ;;  %v766_v41 = vadd.f32 %v765_v19, %v751_v42  ;;  %v803_v37 = vadd.f32 %v802_v8, %v788_v45  ;;  %v634_v62 = vfloor.f32 %v618_v12 }
  0xd0   : > { %v603_v61 = vmax.f32 %v587_v36, 0.0  ;;  %v572_v22 = vadd.f32 0.001, %v556_v35  ;;  %v558_v53 = vadd.f32 %v1431_v18, %v526_v13  ;;  %v703_v27 = vcvt.s32.f32 %v1497_v23 }
  0xd1   : > { %v752_v3 = vand.u32 2147483647, %v715_v57  ;;  %v789_v26 = vmul.f32 %v715_v57, %v715_v57  ;;  %v509_v25 = vadd.f32 %v493_v33, %v475_v47  ;;  %v1600_v55 = vcvt.s32.f32 %v1390_v50 }
  0xd2   : > { %v619_v34 = vmin.f32 %v603_v61, 65535.0  ;;  %v588_v52 = vmul.f32 65536.0, %v572_v22  ;;  %v574_v5 = vadd.f32 0.001, %v558_v53  ;;  %v734_v14 = vadd.f32 %v1458_v11, %v703_v27 }
  0xd3   : > { %v767_v63 = vadd.f32 %v766_v41, %v752_v3  ;;  %v804_v7 = vadd.f32 %v803_v37, %v789_v26  ;;  %v716_v6 = vsub.f32 %v634_v62, %v1600_v55  ;;  %v525_v29 = vmul.f32 0.05, %v509_v25 }
  0xd4   : > { %v635_v31 = vfloor.f32 %v619_v34  ;;  %v604_v40 = vmax.f32 %v588_v52, 0.0  ;;  %v590_v38 = vmul.f32 65536.0, %v574_v5  ;;  %v1601_v58 = vcvt.s32.f32 %v1411_v39 }
  0xd5   : > { %v753_v15 = vand.u32 2147483647, %v716_v6  ;;  %v790_v49 = vmul.f32 %v716_v6, %v716_v6  ;;  %v557_v18 = vadd.f32 %v1451_v60, %v525_v29  ;;  %v704_v50 = vcvt.s32.f32 %v1472_v9 }
  0xd6   : > { %v717_v16 = vsub.f32 %v635_v31, %v1601_v58  ;;  %v620_v46 = vmin.f32 %v604_v40, 65535.0  ;;  %v606_v59 = vmax.f32 %v590_v38, 0.0  ;;  %v1603_v60 = vcvt.s32.f32 %v1602_v51 }
  0xd7   : > { %v768_v23 = vadd.f32 %v767_v63, %v753_v15  ;;  %v805_v47 = vadd.f32 %v804_v7, %v790_v49  ;;  %v573_v54 = vadd.f32 0.001, %v557_v18  ;;  %v735_v1 = vadd.f32 %v734_v14, %v704_v50 }
  0xd8   : > { %v754_v21 = vand.u32 2147483647, %v717_v16  ;;  %v791_v0 = vmul.f32 %v717_v16, %v717_v16  ;;  %v636_v28 = vfloor.f32 %v620_v46  ;;  %v622_v4 = vmin.f32 %v606_v59, 65535.0 }
  0xd9   : > { %v589_v11 = vmul.f32 65536.0, %v573_v54  ;;  %v736_v39 = vrot.slane %v735_v1, 4 }
  0xda   : > { %v769_v19 = vadd.f32 %v768_v23, %v754_v21  ;;  %v806_v8 = vadd.f32 %v805_v47, %v791_v0  ;;  %v718_v20 = vsub.f32 %v636_v28, %v1603_v60  ;;  %v638_v24 = vfloor.f32 %v622_v4 }
  0xdb   : > { %v605_v44 = vmax.f32 %v589_v11, 0.0  ;;  %v737_v48 = vadd.f32 %v736_v39, %v735_v1 }
  0xdc   : > { %v755_v30 = vand.u32 2147483647, %v718_v20  ;;  %v792_v56 = vmul.f32 %v718_v20, %v718_v20  ;;  %v720_v9 = vsub.f32 %v638_v24, %v704_v50 }
  0xdd   : > { %v621_v32 = vmin.f32 %v605_v44, 65535.0  ;;  %v738_v12 = vrot.slane %v737_v48, 2 }
  0xde   : > { %v770_v17 = vadd.f32 %v769_v19, %v755_v30  ;;  %v807_v42 = vadd.f32 %v806_v8, %v792_v56  ;;  %v757_v36 = vand.u32 2147483647, %v720_v9  ;;  %v794_v33 = vmul.f32 %v720_v9, %v720_v9 }
  0xdf   : > { %v637_v45 = vfloor.f32 %v621_v32  ;;  %v739_v3 = vadd.f32 %v738_v12, %v737_v48 }
  0xe1   : > { %v719_v10 = vsub.f32 %v637_v45, %v703_v27  ;;  %v740_v53 = vrot.slane %v739_v3, 1 }
  0xe3   : > { %v756_v43 = vand.u32 2147483647, %v719_v10  ;;  %v793_v57 = vmul.f32 %v719_v10, %v719_v10  ;;  %v741_v55 = vadd.f32 %v740_v53, %v739_v3 }
  0xe5   : > { %v771_v41 = vadd.f32 %v770_v17, %v756_v43  ;;  %v808_v37 = vadd.f32 %v807_v42, %v793_v57 }
  0xe7   : > { %v772_v35 = vadd.f32 %v771_v41, %v757_v36  ;;  %v809_v13 = vadd.f32 %v808_v37, %v794_v33 }
  0xe9   : > { %v773_v26 = vrot.slane %v772_v35, 4  ;;  %v810_v62 = vrot.slane %v809_v13, 4 }
  0xeb   : > { %v774_v61 = vadd.f32 %v773_v26, %v772_v35  ;;  %v811_v22 = vadd.f32 %v810_v62, %v809_v13 }
  0xed   : > { %v775_v25 = vrot.slane %v774_v61, 2  ;;  %v812_v63 = vrot.slane %v811_v22, 2 }
  0xef   : > { %v776_v7 = vadd.f32 %v775_v25, %v774_v61  ;;  %v813_v27 = vadd.f32 %v812_v63, %v811_v22 }
  0xf1   : > { %v777_v6 = vrot.slane %v776_v7, 1  ;;  %v814_v34 = vrot.slane %v813_v27, 1  ;;  %68 = sbr.rel (!%p66_p0) target bundleno = 7 (0x7), region = 38 }
  0xf3   : > { %v778_v52 = vadd.f32 %v777_v6, %v776_v7  ;;  %v815_v5 = vadd.f32 %v814_v34, %v813_v27 }
  0xf5   : > { %v817_v29 = vsel %vm816_vm6, %v741_v55, %v778_v52 }
  0xf6   : > { %v819_v15 = vsel %vm818_vm7, %v817_v29, %v815_v5 }
  0xf7   : > { %822 = vst [vmem:[%s821_s22] sm:$0x7] %v819_v15 }

</bundles_post_ra>
